<compile_context>
chip_gen: v5e
topology: v5e:2x2
jax: 0.10.0
libtpu: 0.0.40
codegen_flags: <defaults>
</compile_context>

<pallas_src>
import functools
import math

import jax
import jax.numpy as jnp
import numpy as np
from jax import lax
from jax.experimental import pallas as pl
from jax.experimental.pallas import tpu as pltpu


def _downsample_conv_kernel(xs_ref, w_ref, b_ref, o_ref):
    """3x3 / stride-2 conv for one (image, row-tile) grid step.

    xs_ref : (1, 4, TR+1, Ws, Cin)  stride-2 parity planes of the zero-padded
             input for this row tile (1-row halo baked into the tile):
                 xs[0, 2*a+b, i, j, c] == x_padded[2*(row0+i)+a, 2*j+b, c]
    w_ref  : (9, Cout, Cin)          per-tap weights, tap index t = kh*3 + kw
    b_ref  : (Cout, 1)               bias (f32)
    o_ref  : (1, Cout, TR*Wo)        channel-major output slab
    """
    _, _, hb, ws, cin = xs_ref.shape
    tr, wo = hb - 1, ws - 1
    cout = w_ref.shape[1]

    # 9 accumulating NT matmuls (no materialized im2col scratch); every tap is
    # a contiguous slice of one parity plane.
    acc = jnp.zeros((cout, tr * wo), dtype=jnp.float32)
    for kh in range(3):
        for kw in range(3):
            p = (kh % 2) * 2 + (kw % 2)          # which parity plane
            qh, qw = kh // 2, kw // 2            # shift inside that plane
            tap = xs_ref[0, p, qh:qh + tr, qw:qw + wo, :].reshape(tr * wo, cin)
            w_tap = w_ref[kh * 3 + kw]           # (Cout, Cin)
            acc = acc + lax.dot_general(
                w_tap, tap,
                dimension_numbers=(((1,), (1,)), ((), ())),
                preferred_element_type=jnp.float32,
            )
    y = acc + b_ref[...]                          # f32 bias epilogue
    o_ref[...] = y[None].astype(o_ref.dtype)


def _vmem_capacity_bytes():
    try:
        cap = getattr(pltpu.get_tpu_info(), "vmem_capacity_bytes", None)
        if cap:
            return int(cap)
    except Exception:
        pass
    return 64 * 1024 * 1024        # v7x floor — safe everywhere


def _choose_row_tile(ho, wo, step_bytes, budget):
    """Pick (TR, n_tiles): TR output rows per grid step.

    TR is a multiple of lcm(8, 128/gcd(Wo,128)) so the per-tile output slab
    (Cout, TR*Wo) stays lane-aligned (unmasked stores).  Prefers >= 2 tiles
    (megacore sharding at N=1, pipeline overlap) while keeping the per-step
    working set under the VMEM budget and minimizing padded-row waste.
    """
    g = 128 // math.gcd(wo, 128)
    g = (8 * g) // math.gcd(8, g)                 # lcm(8, g)
    if ho < 2 * g:                                # cannot form >= 2 aligned tiles
        return ho, 1
    best = None
    for nt in range(2, ho // g + 1):
        tr = math.ceil(math.ceil(ho / nt) / g) * g
        nt_eff = math.ceil(ho / tr)
        if nt_eff < 2:
            continue
        waste = nt_eff * tr - ho
        key = (step_bytes(tr) > budget, waste, -tr)
        if best is None or key < best[0]:
            best = (key, tr, nt_eff)
    if best is None:
        return ho, 1
    return best[1], best[2]


def swinir_downsample(x_nchw, weight_oihw, bias, *, compute_dtype=None,
                      out_dtype=None):
    """Conv2d(kernel=3, stride=2, padding=1) + bias.  NCHW in/out, OIHW weight."""
    n, cin, h, w = x_nchw.shape
    cout, cin_w, kh, kw = weight_oihw.shape
    assert cin == cin_w and (kh, kw) == (3, 3)

    compute_dtype = np.dtype(x_nchw.dtype if compute_dtype is None else compute_dtype)
    out_dtype = np.dtype(x_nchw.dtype if out_dtype is None else out_dtype)
    in_bytes = compute_dtype.itemsize
    out_bytes = out_dtype.itemsize

    ho = (h + 2 - 3) // 2 + 1
    wo = (w + 2 - 3) // 2 + 1
    ws = wo + 1

    # ---- row-tile / VMEM sizing --------------------------------------------
    vmem_cap = _vmem_capacity_bytes()
    budget = int(vmem_cap * 0.45)                 # per-step working-set target

    def step_bytes(tr):
        xs_blk = 4 * (tr + 1) * ws * cin * in_bytes     # parity-plane row slab
        out_blk = cout * tr * wo * out_bytes            # output slab
        acc = cout * tr * wo * 4                        # f32 accumulator
        wgt = 9 * cout * cin * in_bytes + cout * 4
        return 2 * xs_blk + 2 * out_blk + acc + wgt     # double-buffered I/O

    tr, n_tiles = _choose_row_tile(ho, wo, step_bytes, budget)
    ho_pad = n_tiles * tr
    hs_pad = ho_pad + 1

    # ---- layout: pad + parity split + row tiles (one fused XLA copy) --------
    # TODO(synk): keep the model NHWC end-to-end (or do the stride-2 parity
    # split in-kernel from an ANY-space ref) to drop this extra HBM pass, and
    # handle the qw=1 taps with pltpu.roll to avoid the per-tap sublane slice.
    xp = jnp.pad(x_nchw, ((0, 0), (0, 0),
                          (1, 2 * hs_pad - h - 1),
                          (1, 2 * ws - w - 1)))
    xs = xp.reshape(n, cin, hs_pad, 2, ws, 2)
    xs = xs.transpose(0, 3, 5, 2, 4, 1).reshape(n, 4, hs_pad, ws, cin)
    # Bake the 1-row halo into each row tile (plain Blocked BlockSpecs only).
    row_idx = np.arange(n_tiles)[:, None] * tr + np.arange(tr + 1)[None, :]
    xs_t = xs[:, :, row_idx]                          # (N, 4, nt, TR+1, Ws, Cin)
    xs_t = xs_t.transpose(0, 2, 1, 3, 4, 5)
    xs_t = xs_t.reshape(n * n_tiles, 4, tr + 1, ws, cin).astype(compute_dtype)

    w_t = weight_oihw.transpose(2, 3, 0, 1).reshape(9, cout, cin).astype(compute_dtype)
    b_col = bias.reshape(cout, 1).astype(jnp.float32)

    flops = 2 * n * cout * ho * wo * 9 * cin
    bytes_accessed = (xs_t.size * in_bytes + w_t.size * in_bytes
                      + b_col.size * 4 + n * cout * ho_pad * wo * out_bytes)
    vmem_limit = int(min(vmem_cap * 9 // 10,
                         max(32 * 1024 * 1024, int(step_bytes(tr) * 1.5))))

    out = pl.pallas_call(
        _downsample_conv_kernel,
        out_shape=jax.ShapeDtypeStruct((n, cout, ho_pad * wo), out_dtype),
        grid_spec=pltpu.PrefetchScalarGridSpec(
            num_scalar_prefetch=0,
            grid=(n, n_tiles),
            in_specs=[
                pl.BlockSpec((1, 4, tr + 1, ws, cin),
                             lambda b, r: (b * n_tiles + r, 0, 0, 0, 0)),
                pl.BlockSpec((9, cout, cin), lambda b, r: (0, 0, 0)),
                pl.BlockSpec((cout, 1), lambda b, r: (0, 0)),
            ],
            out_specs=pl.BlockSpec((1, cout, tr * wo), lambda b, r: (b, 0, r)),
        ),
        compiler_params=pltpu.CompilerParams(
            dimension_semantics=("parallel", "parallel"),
            vmem_limit_bytes=vmem_limit,
        ),
        cost_estimate=pl.CostEstimate(flops=flops, transcendentals=0,
                                      bytes_accessed=bytes_accessed),
    )(xs_t, w_t, b_col)

    # Channel-major kernel output -> NCHW is a pure reshape (+ row-pad slice).
    out = out.reshape(n, cout, ho_pad, wo)
    if ho_pad != ho:
        out = out[:, :, :ho, :]
    return out


def reference(x_nchw, weight_oihw, bias):
    """Pure-JAX reference: Conv2d(3, stride=2, padding=1) + bias."""
    y = lax.conv_general_dilated(
        x_nchw, weight_oihw, window_strides=(2, 2),
        padding=((1, 1), (1, 1)),
        dimension_numbers=("NCHW", "OIHW", "NCHW"))
    return y + bias.reshape(1, -1, 1, 1)


if __name__ == "__main__":
    def make_case(key, n, cin, cout, h, w):
        kx, kw_, kb = jax.random.split(key, 3)
        x = jax.random.normal(kx, (n, cin, h, w), dtype=jnp.float32)
        wgt = jax.random.normal(kw_, (cout, cin, 3, 3), dtype=jnp.float32) * 0.1
        b = jax.random.normal(kb, (cout,), dtype=jnp.float32) * 0.1
        return x, wgt, b

    fwd = jax.jit(swinir_downsample)
    fwd_bf16 = jax.jit(swinir_downsample,
                       static_argnames=("compute_dtype", "out_dtype"))

    cases = [
        (2, 4, 8, 16, 16),    # basic, single row tile
        (1, 4, 8, 32, 32),    # N=1, two row tiles (megacore / pipeline path)
        (1, 3, 10, 17, 19),   # odd spatial sizes (padding edge cases)
    ]
    key = jax.random.PRNGKey(0)
    for (n, cin, cout, h, w) in cases:
        key, sub = jax.random.split(key)
        x, wgt, b = make_case(sub, n, cin, cout, h, w)
        out = jax.block_until_ready(fwd(x, wgt, b))
        ref = jax.block_until_ready(reference(x, wgt, b))
        assert out.shape == ref.shape, (out.shape, ref.shape)
        err = float(jnp.max(jnp.abs(out - ref)))
        assert err < 1e-3, f"f32 mismatch {err} for case {(n, cin, cout, h, w)}"

    # bf16 matmul operands (f32 accumulation + f32 bias epilogue).
    x, wgt, b = make_case(jax.random.PRNGKey(1), 2, 4, 8, 16, 16)
    out_bf = jax.block_until_ready(
        fwd_bf16(x, wgt, b, compute_dtype=jnp.bfloat16, out_dtype=jnp.float32))
    ref = jax.block_until_ready(reference(x, wgt, b))
    err = float(jnp.max(jnp.abs(out_bf - ref)))
    assert err < 5e-2, f"bf16 mismatch {err}"

    print("KERNEL_OK")
</pallas_src>

<mosaic_0001>
module attributes {stable_mosaic.version = 11 : i64} {
  func.func @_downsample_conv_kernel(%arg0: i32, %arg1: i32, %arg2: memref<1x4x9x9x4xf32, #tpu.memory_space<vmem>>, %arg3: memref<9x8x4xf32, #tpu.memory_space<vmem>>, %arg4: memref<8x1xf32, #tpu.memory_space<vmem>>, %arg5: memref<1x8x64xf32, #tpu.memory_space<vmem>>) attributes {dimension_semantics = [#tpu.dimension_semantics<parallel>, #tpu.dimension_semantics<parallel>], iteration_bounds = array<i64: 2, 1>, scalar_prefetch = 0 : i64, scratch_operands = 0 : i64, tpu.core_type = #tpu.core_type<tc>, window_params = [{transform_indices = @transform_0, window_bounds = array<i64: 1, 4, 9, 9, 4>}, {pipeline_mode = #tpu.pipeline_mode<synchronous>, transform_indices = @transform_1, window_bounds = array<i64: 9, 8, 4>}, {pipeline_mode = #tpu.pipeline_mode<synchronous>, transform_indices = @transform_2, window_bounds = array<i64: 8, 1>}, {transform_indices = @transform_3, window_bounds = array<i64: 1, 8, 64>}]} {
    %cst = arith.constant 0.000000e+00 : f32
    %0 = vector.broadcast %cst : f32 to vector<8x64xf32>
    %c0 = arith.constant 0 : index
    %c0_0 = arith.constant 0 : index
    %c0_1 = arith.constant 0 : index
    %c0_2 = arith.constant 0 : index
    %c0_3 = arith.constant 0 : index
    %1 = vector.load %arg2[%c0, %c0_0, %c0_1, %c0_2, %c0_3] : memref<1x4x9x9x4xf32, #tpu.memory_space<vmem>>, vector<1x1x8x8x4xf32>
    %2 = vector.shape_cast %1 : vector<1x1x8x8x4xf32> to vector<8x8x4xf32>
    %3 = vector.shape_cast %2 : vector<8x8x4xf32> to vector<64x4xf32>
    %c0_4 = arith.constant 0 : index
    %c0_5 = arith.constant 0 : index
    %c0_6 = arith.constant 0 : index
    %4 = vector.load %arg3[%c0_4, %c0_5, %c0_6] : memref<9x8x4xf32, #tpu.memory_space<vmem>>, vector<1x8x4xf32>
    %5 = vector.shape_cast %4 : vector<1x8x4xf32> to vector<8x4xf32>
    %cst_7 = arith.constant dense<0.000000e+00> : vector<8x64xf32>
    %6 = tpu.matmul %5, %3, %cst_7 {dimension_numbers = #tpu.dot_dimension_numbers<[1], [1], [0], [0], [0, 0, 1, 0], [], []>} : vector<8x4xf32>, vector<64x4xf32>, vector<8x64xf32> -> vector<8x64xf32>
    %7 = arith.addf %0, %6 : vector<8x64xf32>
    %c0_8 = arith.constant 0 : index
    %c1 = arith.constant 1 : index
    %c0_9 = arith.constant 0 : index
    %c0_10 = arith.constant 0 : index
    %c0_11 = arith.constant 0 : index
    %8 = vector.load %arg2[%c0_8, %c1, %c0_9, %c0_10, %c0_11] : memref<1x4x9x9x4xf32, #tpu.memory_space<vmem>>, vector<1x1x8x8x4xf32>
    %9 = vector.shape_cast %8 : vector<1x1x8x8x4xf32> to vector<8x8x4xf32>
    %10 = vector.shape_cast %9 : vector<8x8x4xf32> to vector<64x4xf32>
    %c1_12 = arith.constant 1 : index
    %c0_13 = arith.constant 0 : index
    %c0_14 = arith.constant 0 : index
    %11 = vector.load %arg3[%c1_12, %c0_13, %c0_14] : memref<9x8x4xf32, #tpu.memory_space<vmem>>, vector<1x8x4xf32>
    %12 = vector.shape_cast %11 : vector<1x8x4xf32> to vector<8x4xf32>
    %cst_15 = arith.constant dense<0.000000e+00> : vector<8x64xf32>
    %13 = tpu.matmul %12, %10, %cst_15 {dimension_numbers = #tpu.dot_dimension_numbers<[1], [1], [0], [0], [0, 0, 1, 0], [], []>} : vector<8x4xf32>, vector<64x4xf32>, vector<8x64xf32> -> vector<8x64xf32>
    %14 = arith.addf %7, %13 : vector<8x64xf32>
    %c0_16 = arith.constant 0 : index
    %c0_17 = arith.constant 0 : index
    %c0_18 = arith.constant 0 : index
    %c1_19 = arith.constant 1 : index
    %c0_20 = arith.constant 0 : index
    %15 = vector.load %arg2[%c0_16, %c0_17, %c0_18, %c1_19, %c0_20] : memref<1x4x9x9x4xf32, #tpu.memory_space<vmem>>, vector<1x1x8x8x4xf32>
    %16 = vector.shape_cast %15 : vector<1x1x8x8x4xf32> to vector<8x8x4xf32>
    %17 = vector.shape_cast %16 : vector<8x8x4xf32> to vector<64x4xf32>
    %c2 = arith.constant 2 : index
    %c0_21 = arith.constant 0 : index
    %c0_22 = arith.constant 0 : index
    %18 = vector.load %arg3[%c2, %c0_21, %c0_22] : memref<9x8x4xf32, #tpu.memory_space<vmem>>, vector<1x8x4xf32>
    %19 = vector.shape_cast %18 : vector<1x8x4xf32> to vector<8x4xf32>
    %cst_23 = arith.constant dense<0.000000e+00> : vector<8x64xf32>
    %20 = tpu.matmul %19, %17, %cst_23 {dimension_numbers = #tpu.dot_dimension_numbers<[1], [1], [0], [0], [0, 0, 1, 0], [], []>} : vector<8x4xf32>, vector<64x4xf32>, vector<8x64xf32> -> vector<8x64xf32>
    %21 = arith.addf %14, %20 : vector<8x64xf32>
    %c0_24 = arith.constant 0 : index
    %c2_25 = arith.constant 2 : index
    %c0_26 = arith.constant 0 : index
    %c0_27 = arith.constant 0 : index
    %c0_28 = arith.constant 0 : index
    %22 = vector.load %arg2[%c0_24, %c2_25, %c0_26, %c0_27, %c0_28] : memref<1x4x9x9x4xf32, #tpu.memory_space<vmem>>, vector<1x1x8x8x4xf32>
    %23 = vector.shape_cast %22 : vector<1x1x8x8x4xf32> to vector<8x8x4xf32>
    %24 = vector.shape_cast %23 : vector<8x8x4xf32> to vector<64x4xf32>
    %c3 = arith.constant 3 : index
    %c0_29 = arith.constant 0 : index
    %c0_30 = arith.constant 0 : index
    %25 = vector.load %arg3[%c3, %c0_29, %c0_30] : memref<9x8x4xf32, #tpu.memory_space<vmem>>, vector<1x8x4xf32>
    %26 = vector.shape_cast %25 : vector<1x8x4xf32> to vector<8x4xf32>
    %cst_31 = arith.constant dense<0.000000e+00> : vector<8x64xf32>
    %27 = tpu.matmul %26, %24, %cst_31 {dimension_numbers = #tpu.dot_dimension_numbers<[1], [1], [0], [0], [0, 0, 1, 0], [], []>} : vector<8x4xf32>, vector<64x4xf32>, vector<8x64xf32> -> vector<8x64xf32>
    %28 = arith.addf %21, %27 : vector<8x64xf32>
    %c0_32 = arith.constant 0 : index
    %c3_33 = arith.constant 3 : index
    %c0_34 = arith.constant 0 : index
    %c0_35 = arith.constant 0 : index
    %c0_36 = arith.constant 0 : index
    %29 = vector.load %arg2[%c0_32, %c3_33, %c0_34, %c0_35, %c0_36] : memref<1x4x9x9x4xf32, #tpu.memory_space<vmem>>, vector<1x1x8x8x4xf32>
    %30 = vector.shape_cast %29 : vector<1x1x8x8x4xf32> to vector<8x8x4xf32>
    %31 = vector.shape_cast %30 : vector<8x8x4xf32> to vector<64x4xf32>
    %c4 = arith.constant 4 : index
    %c0_37 = arith.constant 0 : index
    %c0_38 = arith.constant 0 : index
    %32 = vector.load %arg3[%c4, %c0_37, %c0_38] : memref<9x8x4xf32, #tpu.memory_space<vmem>>, vector<1x8x4xf32>
    %33 = vector.shape_cast %32 : vector<1x8x4xf32> to vector<8x4xf32>
    %cst_39 = arith.constant dense<0.000000e+00> : vector<8x64xf32>
    %34 = tpu.matmul %33, %31, %cst_39 {dimension_numbers = #tpu.dot_dimension_numbers<[1], [1], [0], [0], [0, 0, 1, 0], [], []>} : vector<8x4xf32>, vector<64x4xf32>, vector<8x64xf32> -> vector<8x64xf32>
    %35 = arith.addf %28, %34 : vector<8x64xf32>
    %c0_40 = arith.constant 0 : index
    %c2_41 = arith.constant 2 : index
    %c0_42 = arith.constant 0 : index
    %c1_43 = arith.constant 1 : index
    %c0_44 = arith.constant 0 : index
    %36 = vector.load %arg2[%c0_40, %c2_41, %c0_42, %c1_43, %c0_44] : memref<1x4x9x9x4xf32, #tpu.memory_space<vmem>>, vector<1x1x8x8x4xf32>
    %37 = vector.shape_cast %36 : vector<1x1x8x8x4xf32> to vector<8x8x4xf32>
    %38 = vector.shape_cast %37 : vector<8x8x4xf32> to vector<64x4xf32>
    %c5 = arith.constant 5 : index
    %c0_45 = arith.constant 0 : index
    %c0_46 = arith.constant 0 : index
    %39 = vector.load %arg3[%c5, %c0_45, %c0_46] : memref<9x8x4xf32, #tpu.memory_space<vmem>>, vector<1x8x4xf32>
    %40 = vector.shape_cast %39 : vector<1x8x4xf32> to vector<8x4xf32>
    %cst_47 = arith.constant dense<0.000000e+00> : vector<8x64xf32>
    %41 = tpu.matmul %40, %38, %cst_47 {dimension_numbers = #tpu.dot_dimension_numbers<[1], [1], [0], [0], [0, 0, 1, 0], [], []>} : vector<8x4xf32>, vector<64x4xf32>, vector<8x64xf32> -> vector<8x64xf32>
    %42 = arith.addf %35, %41 : vector<8x64xf32>
    %c0_48 = arith.constant 0 : index
    %c0_49 = arith.constant 0 : index
    %c1_50 = arith.constant 1 : index
    %c0_51 = arith.constant 0 : index
    %c0_52 = arith.constant 0 : index
    %43 = vector.load %arg2[%c0_48, %c0_49, %c1_50, %c0_51, %c0_52] : memref<1x4x9x9x4xf32, #tpu.memory_space<vmem>>, vector<1x1x8x8x4xf32>
    %44 = vector.shape_cast %43 : vector<1x1x8x8x4xf32> to vector<8x8x4xf32>
    %45 = vector.shape_cast %44 : vector<8x8x4xf32> to vector<64x4xf32>
    %c6 = arith.constant 6 : index
    %c0_53 = arith.constant 0 : index
    %c0_54 = arith.constant 0 : index
    %46 = vector.load %arg3[%c6, %c0_53, %c0_54] : memref<9x8x4xf32, #tpu.memory_space<vmem>>, vector<1x8x4xf32>
    %47 = vector.shape_cast %46 : vector<1x8x4xf32> to vector<8x4xf32>
    %cst_55 = arith.constant dense<0.000000e+00> : vector<8x64xf32>
    %48 = tpu.matmul %47, %45, %cst_55 {dimension_numbers = #tpu.dot_dimension_numbers<[1], [1], [0], [0], [0, 0, 1, 0], [], []>} : vector<8x4xf32>, vector<64x4xf32>, vector<8x64xf32> -> vector<8x64xf32>
    %49 = arith.addf %42, %48 : vector<8x64xf32>
    %c0_56 = arith.constant 0 : index
    %c1_57 = arith.constant 1 : index
    %c1_58 = arith.constant 1 : index
    %c0_59 = arith.constant 0 : index
    %c0_60 = arith.constant 0 : index
    %50 = vector.load %arg2[%c0_56, %c1_57, %c1_58, %c0_59, %c0_60] : memref<1x4x9x9x4xf32, #tpu.memory_space<vmem>>, vector<1x1x8x8x4xf32>
    %51 = vector.shape_cast %50 : vector<1x1x8x8x4xf32> to vector<8x8x4xf32>
    %52 = vector.shape_cast %51 : vector<8x8x4xf32> to vector<64x4xf32>
    %c7 = arith.constant 7 : index
    %c0_61 = arith.constant 0 : index
    %c0_62 = arith.constant 0 : index
    %53 = vector.load %arg3[%c7, %c0_61, %c0_62] : memref<9x8x4xf32, #tpu.memory_space<vmem>>, vector<1x8x4xf32>
    %54 = vector.shape_cast %53 : vector<1x8x4xf32> to vector<8x4xf32>
    %cst_63 = arith.constant dense<0.000000e+00> : vector<8x64xf32>
    %55 = tpu.matmul %54, %52, %cst_63 {dimension_numbers = #tpu.dot_dimension_numbers<[1], [1], [0], [0], [0, 0, 1, 0], [], []>} : vector<8x4xf32>, vector<64x4xf32>, vector<8x64xf32> -> vector<8x64xf32>
    %56 = arith.addf %49, %55 : vector<8x64xf32>
    %c0_64 = arith.constant 0 : index
    %c0_65 = arith.constant 0 : index
    %c1_66 = arith.constant 1 : index
    %c1_67 = arith.constant 1 : index
    %c0_68 = arith.constant 0 : index
    %57 = vector.load %arg2[%c0_64, %c0_65, %c1_66, %c1_67, %c0_68] : memref<1x4x9x9x4xf32, #tpu.memory_space<vmem>>, vector<1x1x8x8x4xf32>
    %58 = vector.shape_cast %57 : vector<1x1x8x8x4xf32> to vector<8x8x4xf32>
    %59 = vector.shape_cast %58 : vector<8x8x4xf32> to vector<64x4xf32>
    %c8 = arith.constant 8 : index
    %c0_69 = arith.constant 0 : index
    %c0_70 = arith.constant 0 : index
    %60 = vector.load %arg3[%c8, %c0_69, %c0_70] : memref<9x8x4xf32, #tpu.memory_space<vmem>>, vector<1x8x4xf32>
    %61 = vector.shape_cast %60 : vector<1x8x4xf32> to vector<8x4xf32>
    %cst_71 = arith.constant dense<0.000000e+00> : vector<8x64xf32>
    %62 = tpu.matmul %61, %59, %cst_71 {dimension_numbers = #tpu.dot_dimension_numbers<[1], [1], [0], [0], [0, 0, 1, 0], [], []>} : vector<8x4xf32>, vector<64x4xf32>, vector<8x64xf32> -> vector<8x64xf32>
    %63 = arith.addf %56, %62 : vector<8x64xf32>
    %c0_72 = arith.constant 0 : index
    %c0_73 = arith.constant 0 : index
    %64 = vector.load %arg4[%c0_72, %c0_73] : memref<8x1xf32, #tpu.memory_space<vmem>>, vector<8x1xf32>
    %65 = vector.broadcast %64 : vector<8x1xf32> to vector<8x64xf32>
    %66 = arith.addf %63, %65 : vector<8x64xf32>
    %67 = vector.shape_cast %66 : vector<8x64xf32> to vector<1x8x64xf32>
    %c0_74 = arith.constant 0 : index
    %c0_75 = arith.constant 0 : index
    %c0_76 = arith.constant 0 : index
    %68 = vector.load %arg5[%c0_74, %c0_75, %c0_76] : memref<1x8x64xf32, #tpu.memory_space<vmem>>, vector<1x8x64xf32>
    tpu.vector_store %arg5[%c0_74, %c0_75, %c0_76], %67 {strides = array<i32>} : memref<1x8x64xf32, #tpu.memory_space<vmem>>, vector<1x8x64xf32>,
    return
  }
  func.func @transform_0(%arg0: i32, %arg1: i32) -> (i32, i32, i32, i32, i32) {
    %c1_i32 = arith.constant 1 : i32
    %0 = arith.muli %arg0, %c1_i32 : i32
    %1 = arith.addi %0, %arg1 : i32
    %c0_i32 = arith.constant 0 : i32
    %c0_i32_0 = arith.constant 0 : i32
    %c0_i32_1 = arith.constant 0 : i32
    %c0_i32_2 = arith.constant 0 : i32
    %c0_i32_3 = arith.constant 0 : i32
    return %1, %c0_i32, %c0_i32_0, %c0_i32_1, %c0_i32_2 : i32, i32, i32, i32, i32
  }
  func.func @transform_1(%arg0: i32, %arg1: i32) -> (i32, i32, i32) {
    %c0_i32 = arith.constant 0 : i32
    %c0_i32_0 = arith.constant 0 : i32
    %c0_i32_1 = arith.constant 0 : i32
    %c0_i32_2 = arith.constant 0 : i32
    return %c0_i32, %c0_i32_0, %c0_i32_1 : i32, i32, i32
  }
  func.func @transform_2(%arg0: i32, %arg1: i32) -> (i32, i32) {
    %c0_i32 = arith.constant 0 : i32
    %c0_i32_0 = arith.constant 0 : i32
    %c0_i32_1 = arith.constant 0 : i32
    return %c0_i32, %c0_i32_0 : i32, i32
  }
  func.func @transform_3(%arg0: i32, %arg1: i32) -> (i32, i32, i32) {
    %c0_i32 = arith.constant 0 : i32
    %c0_i32_0 = arith.constant 0 : i32
    return %arg0, %c0_i32, %arg1 : i32, i32, i32
  }
}

</mosaic_0001>

<bundles_post_ra>
// kernel: swinir_downsample.1
= control target key start
LH: loop header
LB: loop body
LE: loop exit
PB: predicated region body
PF: predicated region fallthrough
CT: control target
= control target key end

     0   :  { %s1027_s12 = smov 0   ;;  %s1029_s13 = smov 0   ;;  %s1312_s0 = inlined_call_operand.vmem [shape: f32[2,4,9,9,4], index: 0, kind: input, shape index: {}]   ;;  %s1313_s1 = inlined_call_operand.vmem [shape: f32[9,8,4], index: 1, kind: input, shape index: {}]   ;;  %s1314_s2 = inlined_call_operand.vmem [shape: f32[8,1], index: 2, kind: input, shape index: {}]   ;;  %s1315_s3 = inlined_call_operand.vmem [shape: f32[2,8,64], index: 3, kind: output, shape index: {}]  }
   0x1   :  { %s1031_s14 = smov 0  }
   0x2 LB: > { %s25_s15 = sadd.s32 1, %s1000_s13  ;;  %p805_p0 = scmp.ge.s32.totalorder %s1004_s14, 1  ;;  %s1004_s14 = sphi %s1031_s14, %s13_s14   ;;  %s1000_s13 = sphi %s1029_s13, %s1317_s13   ;;  %s996_s12 = sphi %s1027_s12, %s1316_s12  }
   0x3   : > { %p27_p1 = scmp.ge.s32.totalorder %s25_s15, 2  ;;  %p155_p2 = scmp.lt.s32.totalorder %s1004_s14, 3 }
   0x5   : > { %s1319_s15 = smov (%p27_p1, %s25_s15), 0  ;;  %p156_p3 = pnand %p805_p0, %p155_p2 }
   0x6   : > { %p183_p4 = scmp.lt.s32.totalorder (!%p156_p3), %s996_s12, 1 }
   0x7   : > { %159 = sbr.rel (%p156_p3) target bundleno = 243 (0xf3), region = 32 }
   0xc   : > { %s1321_s12 = smov (!%p183_p4, %s996_s12), 1  ;;  %vm216_vm0 = vcmask 31744   ;;  %v835_v36 = vld [vmem:[%s1313_s1 + $0x10] sm:$0xff]  ;;  %v816_v37 = vld [vmem:[%s1313_s1 + $0x8] sm:$0xff]  ;;  %v853_v39 = vld [vmem:[%s1313_s1 + $0x18] sm:$0xff]  ;;  %v1006_v57 = vmov 0  }
   0xd   : > { %s955_s16 = smul.u32 576, %s1321_s12  ;;  %v204_v40 = vld [vmem:[%s1313_s1] sm:$0xff]  ;;  %v907_v55 = vld [vmem:[%s1313_s1 + $0x30] sm:$0xff]  ;;  %981 = vset.pattern.permute.xlu0 %v1006_v57  ;;  %v925_v59 = vld [vmem:[%s1313_s1 + $0x38] sm:$0xff]  ;;  %s807_s17 = sshll.u32 %s1321_s12, 3  ;;  %vm728_vm1 = vcmask 523264  }
   0xe   : > { %v871_v56 = vld [vmem:[%s1313_s1 + $0x20] sm:$0xff]  ;;  %v889_v60 = vld [vmem:[%s1313_s1 + $0x28] sm:$0xff]  ;;  %s195_s20 = scalar_lea.vmem %s1315_s3, %s807_s17 }
   0xf   : > { %s1051_s19 = scalar_lea.vmem %s1312_s0, %s955_s16  ;;  %v721_v58 = vld [vmem:[%s1314_s2] sm:$0xff] }
  0x10   : > { %v1054_v0 = vld [vmem:[%s1051_s19 + $0x100] sm:$0xff]  ;;  %v1057_v1 = vld [vmem:[%s1051_s19 + $0x71] sm:$0xff]  ;;  %724 = vperm.xlu0 %981, %v721_v58  }
  0x11   : > { %817 = vmatpush.xpose.msk.msra.mxu0 %vm216_vm0, %v1054_v0  ;;  %836 = vmatpush.xpose.msk.msra.mxu2 %vm216_vm0, %v1057_v1  ;;  %v852_v2 = vld [vmem:[%s1051_s19 + $0x190] sm:$0xff]  ;;  %v1074_v5 = vld [vmem:[%s1051_s19 + $0x61] sm:$0xff] }
  0x12   : > { %v1065_v3 = vld [vmem:[%s1051_s19 + $0x70] sm:$0xff]  ;;  %854 = vmatpush.xpose.msk.msra.mxu3 %vm216_vm0, %v852_v2  ;;  %v851_v6 = vld [vmem:[%s1051_s19 + $0x180] sm:$0xff] }
  0x13   : > { %v1068_v4 = vld [vmem:[%s1051_s19 + $0xf0] sm:$0xff]  ;;  %826 = vmatpush.xpose.msk.msra.mxu1 %vm216_vm0, %v1065_v3  ;;  %v1078_v7 = vld [vmem:[%s1051_s19 + $0x60] sm:$0xff] }
  0x14   : > { %v1085_v8 = vld [vmem:[%s1051_s19 + $0xe0] sm:$0xff]  ;;  %v1091_v9 = vld [vmem:[%s1051_s19 + $0x51] sm:$0xff] }
  0x15   : > { %818 = vmatpush.xpose.msk.msra.mxu0 %vm216_vm0, %v1068_v4  ;;  %837 = vmatpush.xpose.msk.msra.mxu2 %vm216_vm0, %v1074_v5  ;;  %v850_v10 = vld [vmem:[%s1051_s19 + $0x170] sm:$0xff]  ;;  %v1108_v13 = vld [vmem:[%s1051_s19 + $0x41] sm:$0xff] }
  0x16   : > { %855 = vmatpush.xpose.msk.msra.mxu3 %vm216_vm0, %v851_v6  ;;  %v1095_v11 = vld [vmem:[%s1051_s19 + $0x50] sm:$0xff]  ;;  %v849_v14 = vld [vmem:[%s1051_s19 + $0x160] sm:$0xff] }
  0x17   : > { %827 = vmatpush.xpose.msk.msra.mxu1 %vm216_vm0, %v1078_v7  ;;  %v1102_v12 = vld [vmem:[%s1051_s19 + $0xd0] sm:$0xff]  ;;  %v1112_v15 = vld [vmem:[%s1051_s19 + $0x40] sm:$0xff] }
  0x18   : > { %v1119_v16 = vld [vmem:[%s1051_s19 + $0xc0] sm:$0xff]  ;;  %v1125_v17 = vld [vmem:[%s1051_s19 + $0x31] sm:$0xff] }
  0x19   : > { %819 = vmatpush.xpose.msk.msra.mxu0 %vm216_vm0, %v1085_v8  ;;  %838 = vmatpush.xpose.msk.msra.mxu2 %vm216_vm0, %v1091_v9  ;;  %v848_v18 = vld [vmem:[%s1051_s19 + $0x150] sm:$0xff]  ;;  %v1142_v21 = vld [vmem:[%s1051_s19 + $0x21] sm:$0xff] }
  0x1a   : > { %856 = vmatpush.xpose.msk.msra.mxu3 %vm216_vm0, %v850_v10  ;;  %v1129_v19 = vld [vmem:[%s1051_s19 + $0x30] sm:$0xff]  ;;  %v847_v22 = vld [vmem:[%s1051_s19 + $0x140] sm:$0xff] }
  0x1b   : > { %828 = vmatpush.xpose.msk.msra.mxu1 %vm216_vm0, %v1095_v11  ;;  %v1136_v20 = vld [vmem:[%s1051_s19 + $0xb0] sm:$0xff]  ;;  %v1146_v23 = vld [vmem:[%s1051_s19 + $0x20] sm:$0xff] }
  0x1c   : > { %v1153_v24 = vld [vmem:[%s1051_s19 + $0xa0] sm:$0xff]  ;;  %v1159_v25 = vld [vmem:[%s1051_s19 + $0x11] sm:$0xff] }
  0x1d   : > { %820 = vmatpush.xpose.msk.msra.mxu0 %vm216_vm0, %v1102_v12  ;;  %839 = vmatpush.xpose.msk.msra.mxu2 %vm216_vm0, %v1108_v13  ;;  %v846_v26 = vld [vmem:[%s1051_s19 + $0x130] sm:$0xff]  ;;  %v311_v29 = vld [vmem:[%s1051_s19 + $0x1] sm:$0xff] }
  0x1e   : > { %857 = vmatpush.xpose.msk.msra.mxu3 %vm216_vm0, %v849_v14  ;;  %v1163_v27 = vld [vmem:[%s1051_s19 + $0x10] sm:$0xff]  ;;  %v870_v30 = vld [vmem:[%s1051_s19 + $0x220] sm:$0xff] }
  0x1f   : > { %829 = vmatpush.xpose.msk.msra.mxu1 %vm216_vm0, %v1112_v15  ;;  %v808_v28 = vld [vmem:[%s1051_s19 + $0x90] sm:$0xff]  ;;  %v906_v31 = vld [vmem:[%s1051_s19 + $0x80] sm:$0xff] }
  0x20   : > { %v845_v32 = vld [vmem:[%s1051_s19 + $0x120] sm:$0xff]  ;;  %v924_v34 = vld [vmem:[%s1051_s19 + $0x110] sm:$0xff] }
  0x21   : > { %821 = vmatpush.xpose.msk.msra.mxu0 %vm216_vm0, %v1119_v16  ;;  %840 = vmatpush.xpose.msk.msra.mxu2 %vm216_vm0, %v1125_v17  ;;  %v196_v33 = vld [vmem:[%s1051_s19] sm:$0xff]  ;;  %v888_v35 = vld [vmem:[%s1051_s19 + $0x191] sm:$0xff] }
  0x22   : > { %858 = vmatpush.xpose.msk.msra.mxu3 %vm216_vm0, %v848_v18  ;;  %v869_v38 = vld [vmem:[%s1051_s19 + $0x210] sm:$0xff]  ;;  %v887_v41 = vld [vmem:[%s1051_s19 + $0x181] sm:$0xff] }
  0x23   : > { %830 = vmatpush.xpose.msk.msra.mxu1 %vm216_vm0, %v1129_v19  ;;  %v868_v42 = vld [vmem:[%s1051_s19 + $0x200] sm:$0xff]  ;;  %v886_v43 = vld [vmem:[%s1051_s19 + $0x171] sm:$0xff] }
  0x24   : > { %v867_v44 = vld [vmem:[%s1051_s19 + $0x1f0] sm:$0xff]  ;;  %v885_v45 = vld [vmem:[%s1051_s19 + $0x161] sm:$0xff] }
  0x25   : > { %822 = vmatpush.xpose.msk.msra.mxu0 %vm216_vm0, %v1136_v20  ;;  %841 = vmatpush.xpose.msk.msra.mxu2 %vm216_vm0, %v1142_v21  ;;  %v866_v46 = vld [vmem:[%s1051_s19 + $0x1e0] sm:$0xff]  ;;  %v884_v47 = vld [vmem:[%s1051_s19 + $0x151] sm:$0xff] }
  0x26   : > { %859 = vmatpush.xpose.msk.msra.mxu3 %vm216_vm0, %v847_v22  ;;  %v865_v48 = vld [vmem:[%s1051_s19 + $0x1d0] sm:$0xff]  ;;  %v883_v49 = vld [vmem:[%s1051_s19 + $0x141] sm:$0xff] }
  0x27   : > { %831 = vmatpush.xpose.msk.msra.mxu1 %vm216_vm0, %v1146_v23  ;;  %v864_v50 = vld [vmem:[%s1051_s19 + $0x1c0] sm:$0xff]  ;;  %v882_v51 = vld [vmem:[%s1051_s19 + $0x131] sm:$0xff] }
  0x28   : > { %v863_v52 = vld [vmem:[%s1051_s19 + $0x1b0] sm:$0xff]  ;;  %v942_v53 = vld [vmem:[%s1051_s19 + $0x81] sm:$0xff] }
  0x29   : > { %823 = vmatpush.xpose.msk.msra.mxu0 %vm216_vm0, %v1153_v24  ;;  %842 = vmatpush.xpose.msk.msra.mxu2 %vm216_vm0, %v1159_v25  ;;  %v881_v54 = vld [vmem:[%s1051_s19 + $0x121] sm:$0xff] }
  0x2a   : > { %860 = vmatpush.xpose.msk.msra.mxu3 %vm216_vm0, %v846_v26  ;;  %v943_v61 = vld [vmem:[%s1313_s1 + $0x40] sm:$0xff] }
  0x2b   : > { %832 = vmatpush.xpose.msk.msra.mxu1 %vm216_vm0, %v1163_v27 }
  0x2d   : > { %824 = vmatpush.xpose.msk.msra.mxu0 %vm216_vm0, %v808_v28  ;;  %843 = vmatpush.xpose.msk.msra.mxu2 %vm216_vm0, %v311_v29 }
  0x2e   : > { %861 = vmatpush.xpose.msk.msra.mxu3 %vm216_vm0, %v845_v32 }
  0x2f   : > { %833 = vmatpush.xpose.msk.msra.mxu1 %vm216_vm0, %v196_v33 }
  0x30   : > { %844 = vmatmul.msk.f32.vlgmr.msra.gmra.mxu2 %vm216_vm0, %v835_v36  ;;  %825 = vmatmul.msk.f32.vlgmr.msra.gmra.mxu0 %vm216_vm0, %v816_v37 }
  0x31   : > { %872 = vmatpush.xpose.msk.msrb.mxu0 %vm216_vm0, %v870_v30  ;;  %908 = vmatpush.xpose.msk.msrb.mxu2 %vm216_vm0, %v906_v31 }
  0x32   : > { %926 = vmatpush.xpose.msk.msrb.mxu3 %vm216_vm0, %v924_v34  ;;  %834 = vmatmul.msk.f32.vlgmr.msra.gmra.mxu1 %vm216_vm0, %v204_v40 }
  0x33   : > { %890 = vmatpush.xpose.msk.msrb.mxu1 %vm216_vm0, %v888_v35  ;;  %862 = vmatmul.msk.f32.vlgmr.msra.gmra.mxu3 %vm216_vm0, %v853_v39 }
  0x35   : > { %873 = vmatpush.xpose.msk.msrb.mxu0 %vm216_vm0, %v869_v38  ;;  %909 = vmatpush.xpose.msk.msrb.mxu2 %vm216_vm0, %v1065_v3 }
  0x36   : > { %927 = vmatpush.xpose.msk.msrb.mxu3 %vm216_vm0, %v1054_v0 }
  0x37   : > { %891 = vmatpush.xpose.msk.msrb.mxu1 %vm216_vm0, %v887_v41 }
  0x39   : > { %874 = vmatpush.xpose.msk.msrb.mxu0 %vm216_vm0, %v868_v42  ;;  %910 = vmatpush.xpose.msk.msrb.mxu2 %vm216_vm0, %v1078_v7 }
  0x3a   : > { %928 = vmatpush.xpose.msk.msrb.mxu3 %vm216_vm0, %v1068_v4 }
  0x3b   : > { %892 = vmatpush.xpose.msk.msrb.mxu1 %vm216_vm0, %v886_v43 }
  0x3d   : > { %875 = vmatpush.xpose.msk.msrb.mxu0 %vm216_vm0, %v867_v44  ;;  %911 = vmatpush.xpose.msk.msrb.mxu2 %vm216_vm0, %v1095_v11 }
  0x3e   : > { %929 = vmatpush.xpose.msk.msrb.mxu3 %vm216_vm0, %v1085_v8 }
  0x3f   : > { %893 = vmatpush.xpose.msk.msrb.mxu1 %vm216_vm0, %v885_v45 }
  0x41   : > { %876 = vmatpush.xpose.msk.msrb.mxu0 %vm216_vm0, %v866_v46  ;;  %912 = vmatpush.xpose.msk.msrb.mxu2 %vm216_vm0, %v1112_v15 }
  0x42   : > { %930 = vmatpush.xpose.msk.msrb.mxu3 %vm216_vm0, %v1102_v12 }
  0x43   : > { %894 = vmatpush.xpose.msk.msrb.mxu1 %vm216_vm0, %v884_v47 }
  0x45   : > { %877 = vmatpush.xpose.msk.msrb.mxu0 %vm216_vm0, %v865_v48  ;;  %913 = vmatpush.xpose.msk.msrb.mxu2 %vm216_vm0, %v1129_v19 }
  0x46   : > { %931 = vmatpush.xpose.msk.msrb.mxu3 %vm216_vm0, %v1119_v16 }
  0x47   : > { %895 = vmatpush.xpose.msk.msrb.mxu1 %vm216_vm0, %v883_v49 }
  0x49   : > { %878 = vmatpush.xpose.msk.msrb.mxu0 %vm216_vm0, %v864_v50  ;;  %914 = vmatpush.xpose.msk.msrb.mxu2 %vm216_vm0, %v1146_v23 }
  0x4a   : > { %932 = vmatpush.xpose.msk.msrb.mxu3 %vm216_vm0, %v1136_v20 }
  0x4b   : > { %896 = vmatpush.xpose.msk.msrb.mxu1 %vm216_vm0, %v882_v51 }
  0x4d   : > { %879 = vmatpush.xpose.msk.msrb.mxu0 %vm216_vm0, %v863_v52  ;;  %915 = vmatpush.xpose.msk.msrb.mxu2 %vm216_vm0, %v1163_v27 }
  0x4e   : > { %933 = vmatpush.xpose.msk.msrb.mxu3 %vm216_vm0, %v1153_v24 }
  0x4f   : > { %897 = vmatpush.xpose.msk.msrb.mxu1 %vm216_vm0, %v881_v54 }
  0x50   : > { %916 = vmatmul.msk.f32.vlgmr.msrb.gmra.mxu2 %vm216_vm0, %v907_v55  ;;  %880 = vmatmul.msk.f32.vlgmr.msrb.gmra.mxu0 %vm216_vm0, %v871_v56 }
  0x51   : > { %944 = vmatpush.xpose.msk.msra.mxu0 %vm216_vm0, %v942_v53  ;;  %934 = vmatmul.msk.f32.vlgmr.msrb.gmra.mxu3 %vm216_vm0, %v925_v59 }
  0x52   : > { %898 = vmatmul.msk.f32.vlgmr.msrb.gmra.mxu1 %vm216_vm0, %v889_v60 }
  0x55   : > { %945 = vmatpush.xpose.msk.msra.mxu0 %vm216_vm0, %v1057_v1 }
  0x59   : > { %946 = vmatpush.xpose.msk.msra.mxu0 %vm216_vm0, %v1074_v5 }
  0x5d   : > { %947 = vmatpush.xpose.msk.msra.mxu0 %vm216_vm0, %v1091_v9 }
  0x61   : > { %948 = vmatpush.xpose.msk.msra.mxu0 %vm216_vm0, %v1108_v13 }
  0x65   : > { %949 = vmatpush.xpose.msk.msra.mxu0 %vm216_vm0, %v1125_v17 }
  0x69   : > { %950 = vmatpush.xpose.msk.msra.mxu0 %vm216_vm0, %v1142_v21 }
  0x6d   : > { %951 = vmatpush.xpose.msk.msra.mxu0 %vm216_vm0, %v1159_v25 }
  0x70   : > { %952 = vmatmul.msk.f32.vlgmr.msra.gmra.mxu0 %vm216_vm0, %v943_v61 }
  0x82   : > { %v725_v14 = vpop.permute.xlu0 %724 }
  0xad   : > { %v261_v63 = vpop.f32.mrf.mxu0 }
  0xaf   : > { %v308_v62 = vpop.f32.mrf.mxu1 }
  0xb0   : > { %v309_v0 = vadd.f32 %v308_v62, %v261_v63 }
  0xb3   : > { %v365_v1 = vpop.f32.mrf.mxu2 }
  0xb4   : > { %v368_v2 = vadd.f32 %v365_v1, %v309_v0 }
  0xb6   : > { %v424_v3 = vpop.f32.mrf.mxu3 }
  0xb7   : > { %v427_v4 = vadd.f32 %v424_v3, %v368_v2 }
  0xcd   : > { %v483_v5 = vpop.f32.mrf.mxu0 }
  0xce   : > { %v486_v6 = vadd.f32 %v483_v5, %v427_v4 }
  0xcf   : > { %v541_v7 = vpop.f32.mrf.mxu1 }
  0xd0   : > { %v544_v8 = vadd.f32 %v541_v7, %v486_v6 }
  0xd3   : > { %v600_v9 = vpop.f32.mrf.mxu2 }
  0xd4   : > { %v603_v10 = vadd.f32 %v600_v9, %v544_v8  ;;  %v659_v11 = vpop.f32.mrf.mxu3 }
  0xd6   : > { %v662_v12 = vadd.f32 %v659_v11, %v603_v10 }
  0xed   : > { %v717_v13 = vpop.f32.mrf.mxu0 }
  0xee   : > { %v720_v15 = vadd.f32 %v717_v13, %v662_v12 }
  0xf0   : > { %v727_v16 = vadd.f32 %v725_v14, %v720_v15 }
  0xf2   : > { %729 = vst.msk [vmem:[%s195_s20] sm:$0xff] %vm728_vm1, %v727_v16 }
  0xf3 PF: > { %s13_s14 = sadd.s32 1, %s1004_s14   ;;  %s1316_s12 = smov %s1000_s13 }
  0xf4   : > { %p10_p5 = scmp.ge.s32.totalorder %s13_s14, 4   ;;  %s1317_s13 = smov %s1319_s15 }
  0xf6   :  { %12 = sbr.rel (!%p10_p5) target bundleno = 2 (0x2), region = 75 }

</bundles_post_ra>
